<compile_context>
chip_gen: v5e
topology: v5e:2x2
jax: 0.10.0
libtpu: 0.0.40
codegen_flags: <defaults>
</compile_context>

<pallas_src>
import jax
import jax.numpy as jnp
import numpy as np
from jax.experimental import pallas as pl
from jax.experimental.pallas import tpu as pltpu


def _make_fused_kernel(H, W, cin, mid, cout, pad):
    """Builds the fused two-layer conv-BN-ReLU kernel (one image per program)."""
    HW = H * W

    def conv_bn_relu(mask0, mask2, xpf_ref, p_ref, c_in, w_ref, b_ref):
        # im2col: 9 shifted taps of the flat, row-padded activation. Each tap
        # is a lane-dense (c_in, H*W) window; horizontal shifts (dx != 1) wrap
        # one column per row, which the precomputed column mask zeroes out.
        for dy in range(3):
            for dx in range(3):
                start = pad - (W + 1) + dy * W + dx
                tap = xpf_ref[:, start:start + HW]
                if dx == 0:
                    tap = tap * mask0
                elif dx == 2:
                    tap = tap * mask2
                row = (dy * 3 + dx) * c_in
                p_ref[row:row + c_in, :] = tap
        # One MXU matmul over the whole 9*c_in contraction, lane-dense output.
        # BN scale is already folded into w_ref; only bias-add + ReLU remain.
        acc = jnp.dot(w_ref[...], p_ref[...], preferred_element_type=jnp.float32)
        return jnp.maximum(acc + b_ref[...], 0.0)          # (c_out, H*W)

    def kernel(x_ref, mask_ref, w1_ref, b1_ref, w2_ref, b2_ref,
               o_ref, xpf1_ref, p1_ref, xpf2_ref, p2_ref):
        # Hoist the two horizontal-halo masks once per program.
        mask0 = mask_ref[0:1, :]
        mask2 = mask_ref[2:3, :]

        # ---- layer 1: build the row-padded flat input inside VMEM ----------
        zpad1 = jnp.zeros((cin, pad), jnp.float32)
        xpf1_ref[:, :pad] = zpad1                     # left (top-row) halo
        xpf1_ref[:, pad + HW:] = zpad1                # right (bottom-row) halo
        xpf1_ref[:, pad:pad + HW] = x_ref[0].astype(jnp.float32)
        y1 = conv_bn_relu(mask0, mask2, xpf1_ref, p1_ref, cin, w1_ref, b1_ref)

        # ---- layer 2: intermediate activation stays in VMEM (fused) --------
        zpad2 = jnp.zeros((mid, pad), jnp.float32)
        xpf2_ref[:, :pad] = zpad2
        xpf2_ref[:, pad + HW:] = zpad2
        xpf2_ref[:, pad:pad + HW] = y1
        y2 = conv_bn_relu(mask0, mask2, xpf2_ref, p2_ref, mid, w2_ref, b2_ref)

        o_ref[0] = y2.astype(o_ref.dtype)             # (Cout, H*W) lane-dense store

    return kernel


def fc_up_conv2_forward(x_nchw, p1, p2, eps=1e-5):
    """Fused forward of fcUpConv2 (eval-mode BN). Input/output are NCHW."""
    N, cin, H, W = x_nchw.shape
    mid = p1["w"].shape[0]
    cout = p2["w"].shape[0]
    HW = H * W
    PAD = 128                       # left/right margin of the flat scratch (>= W+1)
    assert W + 1 <= PAD, "flat-halo scheme assumes W < 128 (row-tile for larger W)"
    LFLAT = PAD + HW + PAD          # flat row-padded scratch length (lane axis)

    def fold(p):
        # (O, I, 3, 3) -> (O, 3, 3, I) -> (O, 9*I); matches the kernel's
        # patches row order (dy*3 + dx)*Cin + cin. BN scale is folded into the
        # weights; conv bias + BN shift are folded into one per-channel bias.
        c_out = p["w"].shape[0]
        w_flat = jnp.transpose(p["w"], (0, 2, 3, 1)).reshape(c_out, -1)
        scale = p["gamma"] / jnp.sqrt(p["rvar"] + eps)
        w_scaled = w_flat * scale[:, None]
        bias = (p["b"] - p["rmean"]) * scale + p["beta"]
        return w_scaled, bias.reshape(c_out, 1)

    w1, b1 = fold(p1)
    w2, b2 = fold(p2)

    # Column masks for the horizontally shifted taps (dx = 0 / 2): zero the one
    # column per row that wraps around in the flattened spatial layout.
    col = jnp.arange(HW, dtype=jnp.int32) % W
    mask = jnp.stack([(col != 0).astype(jnp.float32),
                      jnp.ones((HW,), jnp.float32),
                      (col != W - 1).astype(jnp.float32)], axis=0)      # (3, HW)

    x_flat = x_nchw.reshape(N, cin, HW)     # NCHW with flattened (lane-dense) spatial

    kernel = _make_fused_kernel(H, W, cin, mid, cout, PAD)

    out_flat = pl.pallas_call(
        kernel,
        out_shape=jax.ShapeDtypeStruct((N, cout, HW), x_nchw.dtype),
        grid_spec=pltpu.PrefetchScalarGridSpec(
            num_scalar_prefetch=0,
            grid=(N,),
            in_specs=[
                pl.BlockSpec((1, cin, HW), lambda n: (n, 0, 0)),      # x
                pl.BlockSpec((3, HW), lambda n: (0, 0)),              # column masks
                pl.BlockSpec((mid, 9 * cin), lambda n: (0, 0)),       # w1 (BN-scaled)
                pl.BlockSpec((mid, 1), lambda n: (0, 0)),             # bias1 (folded)
                pl.BlockSpec((cout, 9 * mid), lambda n: (0, 0)),      # w2 (BN-scaled)
                pl.BlockSpec((cout, 1), lambda n: (0, 0)),            # bias2 (folded)
            ],
            out_specs=pl.BlockSpec((1, cout, HW), lambda n: (n, 0, 0)),
            scratch_shapes=[
                pltpu.VMEM((cin, LFLAT), jnp.float32),     # row-padded flat input
                pltpu.VMEM((9 * cin, HW), jnp.float32),    # im2col patches, layer 1
                pltpu.VMEM((mid, LFLAT), jnp.float32),     # row-padded flat mid act.
                pltpu.VMEM((9 * mid, HW), jnp.float32),    # im2col patches, layer 2
            ],
        ),
        compiler_params=pltpu.CompilerParams(
            dimension_semantics=("parallel",),   # batch axis across TCs (megacore)
            vmem_limit_bytes=32 * 1024 * 1024,
        ),
    )(x_flat, mask, w1, b1, w2, b2)

    return out_flat.reshape(N, cout, H, W)       # free: (N,Cout,H*W) is already NCHW


# ----------------------------- parameter setup ------------------------------

def init_fc_up_conv2_params(key, in_size, out_size):
    """Deterministic synthetic parameters matching fcUpConv2.__init__ shapes."""
    mid = in_size // 2

    def conv_bn_params(k, cin, cout):
        kw, kb, kg, kbeta, km, kv = jax.random.split(k, 6)
        return dict(
            w=0.1 * jax.random.normal(kw, (cout, cin, 3, 3), jnp.float32),  # OIHW
            b=0.1 * jax.random.normal(kb, (cout,), jnp.float32),
            gamma=1.0 + 0.1 * jax.random.normal(kg, (cout,), jnp.float32),
            beta=0.1 * jax.random.normal(kbeta, (cout,), jnp.float32),
            rmean=0.1 * jax.random.normal(km, (cout,), jnp.float32),
            rvar=1.0 + 0.5 * jax.random.uniform(kv, (cout,), jnp.float32),
        )

    k1, k2 = jax.random.split(key)
    return conv_bn_params(k1, in_size, mid), conv_bn_params(k2, mid, out_size)


# ------------------------------- reference ----------------------------------

def fc_up_conv2_reference(x_nchw, p1, p2, eps=1e-5):
    x = x_nchw
    for p in (p1, p2):
        y = jax.lax.conv_general_dilated(
            x, p["w"], window_strides=(1, 1), padding="SAME",
            dimension_numbers=("NCHW", "OIHW", "NCHW"))
        y = y + p["b"][None, :, None, None]
        y = (y - p["rmean"][None, :, None, None]) / \
            jnp.sqrt(p["rvar"] + eps)[None, :, None, None]
        y = y * p["gamma"][None, :, None, None] + p["beta"][None, :, None, None]
        x = jnp.maximum(y, 0.0)
    return x


if __name__ == "__main__":
    in_size, out_size = 4, 8          # mid channels = in_size // 2 = 2
    N, H, W = 2, 16, 16

    key = jax.random.PRNGKey(0)
    kx, kp = jax.random.split(key)
    x = jax.random.normal(kx, (N, in_size, H, W), jnp.float32)   # NCHW input
    p1, p2 = init_fc_up_conv2_params(kp, in_size, out_size)

    out = jax.block_until_ready(fc_up_conv2_forward(x, p1, p2))
    ref = jax.block_until_ready(fc_up_conv2_reference(x, p1, p2))

    assert out.shape == (N, out_size, H, W), out.shape
    np.testing.assert_allclose(np.asarray(out), np.asarray(ref),
                               rtol=1e-4, atol=1e-4)
    print("KERNEL_OK")
</pallas_src>

<mosaic_0001>
module attributes {stable_mosaic.version = 11 : i64} {
  func.func @kernel(%arg0: i32, %arg1: memref<1x4x256xf32, #tpu.memory_space<vmem>>, %arg2: memref<3x256xf32, #tpu.memory_space<vmem>>, %arg3: memref<2x36xf32, #tpu.memory_space<vmem>>, %arg4: memref<2x1xf32, #tpu.memory_space<vmem>>, %arg5: memref<8x18xf32, #tpu.memory_space<vmem>>, %arg6: memref<8x1xf32, #tpu.memory_space<vmem>>, %arg7: memref<1x8x256xf32, #tpu.memory_space<vmem>>, %arg8: memref<4x512xf32, #tpu.memory_space<vmem>>, %arg9: memref<36x256xf32, #tpu.memory_space<vmem>>, %arg10: memref<2x512xf32, #tpu.memory_space<vmem>>, %arg11: memref<18x256xf32, #tpu.memory_space<vmem>>) attributes {dimension_semantics = [#tpu.dimension_semantics<parallel>], iteration_bounds = array<i64: 2>, scalar_prefetch = 0 : i64, scratch_operands = 4 : i64, tpu.core_type = #tpu.core_type<tc>, window_params = [{transform_indices = @transform_0, window_bounds = array<i64: 1, 4, 256>}, {pipeline_mode = #tpu.pipeline_mode<synchronous>, transform_indices = @transform_1, window_bounds = array<i64: 3, 256>}, {pipeline_mode = #tpu.pipeline_mode<synchronous>, transform_indices = @transform_2, window_bounds = array<i64: 2, 36>}, {pipeline_mode = #tpu.pipeline_mode<synchronous>, transform_indices = @transform_3, window_bounds = array<i64: 2, 1>}, {pipeline_mode = #tpu.pipeline_mode<synchronous>, transform_indices = @transform_4, window_bounds = array<i64: 8, 18>}, {pipeline_mode = #tpu.pipeline_mode<synchronous>, transform_indices = @transform_5, window_bounds = array<i64: 8, 1>}, {transform_indices = @transform_6, window_bounds = array<i64: 1, 8, 256>}]} {
    %c0 = arith.constant 0 : index
    %c0_0 = arith.constant 0 : index
    %0 = vector.load %arg2[%c0, %c0_0] : memref<3x256xf32, #tpu.memory_space<vmem>>, vector<1x256xf32>
    %c2 = arith.constant 2 : index
    %c0_1 = arith.constant 0 : index
    %1 = vector.load %arg2[%c2, %c0_1] : memref<3x256xf32, #tpu.memory_space<vmem>>, vector<1x256xf32>
    %cst = arith.constant 0.000000e+00 : f32
    %2 = vector.broadcast %cst : f32 to vector<4x128xf32>
    %c0_2 = arith.constant 0 : index
    %c0_3 = arith.constant 0 : index
    %3 = vector.load %arg8[%c0_2, %c0_3] : memref<4x512xf32, #tpu.memory_space<vmem>>, vector<4x128xf32>
    tpu.vector_store %arg8[%c0_2, %c0_3], %2 {strides = array<i32>} : memref<4x512xf32, #tpu.memory_space<vmem>>, vector<4x128xf32>,
    %c0_4 = arith.constant 0 : index
    %c384 = arith.constant 384 : index
    %4 = vector.load %arg8[%c0_4, %c384] : memref<4x512xf32, #tpu.memory_space<vmem>>, vector<4x128xf32>
    tpu.vector_store %arg8[%c0_4, %c384], %2 {strides = array<i32>} : memref<4x512xf32, #tpu.memory_space<vmem>>, vector<4x128xf32>,
    %c0_5 = arith.constant 0 : index
    %c0_6 = arith.constant 0 : index
    %c0_7 = arith.constant 0 : index
    %5 = vector.load %arg1[%c0_5, %c0_6, %c0_7] : memref<1x4x256xf32, #tpu.memory_space<vmem>>, vector<1x4x256xf32>
    %6 = vector.shape_cast %5 : vector<1x4x256xf32> to vector<4x256xf32>
    %c0_8 = arith.constant 0 : index
    %c128 = arith.constant 128 : index
    %7 = vector.load %arg8[%c0_8, %c128] : memref<4x512xf32, #tpu.memory_space<vmem>>, vector<4x256xf32>
    tpu.vector_store %arg8[%c0_8, %c128], %6 {strides = array<i32>} : memref<4x512xf32, #tpu.memory_space<vmem>>, vector<4x256xf32>,
    %c0_9 = arith.constant 0 : index
    %c111 = arith.constant 111 : index
    %8 = vector.load %arg8[%c0_9, %c111] : memref<4x512xf32, #tpu.memory_space<vmem>>, vector<4x256xf32>
    %9 = vector.broadcast %0 : vector<1x256xf32> to vector<4x256xf32>
    %10 = arith.mulf %8, %9 : vector<4x256xf32>
    %c0_10 = arith.constant 0 : index
    %c0_11 = arith.constant 0 : index
    %11 = vector.load %arg9[%c0_10, %c0_11] : memref<36x256xf32, #tpu.memory_space<vmem>>, vector<4x256xf32>
    tpu.vector_store %arg9[%c0_10, %c0_11], %10 {strides = array<i32>} : memref<36x256xf32, #tpu.memory_space<vmem>>, vector<4x256xf32>,
    %c0_12 = arith.constant 0 : index
    %c112 = arith.constant 112 : index
    %12 = vector.load %arg8[%c0_12, %c112] : memref<4x512xf32, #tpu.memory_space<vmem>>, vector<4x256xf32>
    %c4 = arith.constant 4 : index
    %c0_13 = arith.constant 0 : index
    %13 = vector.load %arg9[%c4, %c0_13] : memref<36x256xf32, #tpu.memory_space<vmem>>, vector<4x256xf32>
    tpu.vector_store %arg9[%c4, %c0_13], %12 {strides = array<i32>} : memref<36x256xf32, #tpu.memory_space<vmem>>, vector<4x256xf32>,
    %c0_14 = arith.constant 0 : index
    %c113 = arith.constant 113 : index
    %14 = vector.load %arg8[%c0_14, %c113] : memref<4x512xf32, #tpu.memory_space<vmem>>, vector<4x256xf32>
    %15 = vector.broadcast %1 : vector<1x256xf32> to vector<4x256xf32>
    %16 = arith.mulf %14, %15 : vector<4x256xf32>
    %c8 = arith.constant 8 : index
    %c0_15 = arith.constant 0 : index
    %17 = vector.load %arg9[%c8, %c0_15] : memref<36x256xf32, #tpu.memory_space<vmem>>, vector<4x256xf32>
    tpu.vector_store %arg9[%c8, %c0_15], %16 {strides = array<i32>} : memref<36x256xf32, #tpu.memory_space<vmem>>, vector<4x256xf32>,
    %c0_16 = arith.constant 0 : index
    %c127 = arith.constant 127 : index
    %18 = vector.load %arg8[%c0_16, %c127] : memref<4x512xf32, #tpu.memory_space<vmem>>, vector<4x256xf32>
    %19 = vector.broadcast %0 : vector<1x256xf32> to vector<4x256xf32>
    %20 = arith.mulf %18, %19 : vector<4x256xf32>
    %c12 = arith.constant 12 : index
    %c0_17 = arith.constant 0 : index
    %21 = vector.load %arg9[%c12, %c0_17] : memref<36x256xf32, #tpu.memory_space<vmem>>, vector<4x256xf32>
    tpu.vector_store %arg9[%c12, %c0_17], %20 {strides = array<i32>} : memref<36x256xf32, #tpu.memory_space<vmem>>, vector<4x256xf32>,
    %c0_18 = arith.constant 0 : index
    %c128_19 = arith.constant 128 : index
    %22 = vector.load %arg8[%c0_18, %c128_19] : memref<4x512xf32, #tpu.memory_space<vmem>>, vector<4x256xf32>
    %c16 = arith.constant 16 : index
    %c0_20 = arith.constant 0 : index
    %23 = vector.load %arg9[%c16, %c0_20] : memref<36x256xf32, #tpu.memory_space<vmem>>, vector<4x256xf32>
    tpu.vector_store %arg9[%c16, %c0_20], %22 {strides = array<i32>} : memref<36x256xf32, #tpu.memory_space<vmem>>, vector<4x256xf32>,
    %c0_21 = arith.constant 0 : index
    %c129 = arith.constant 129 : index
    %24 = vector.load %arg8[%c0_21, %c129] : memref<4x512xf32, #tpu.memory_space<vmem>>, vector<4x256xf32>
    %25 = vector.broadcast %1 : vector<1x256xf32> to vector<4x256xf32>
    %26 = arith.mulf %24, %25 : vector<4x256xf32>
    %c20 = arith.constant 20 : index
    %c0_22 = arith.constant 0 : index
    %27 = vector.load %arg9[%c20, %c0_22] : memref<36x256xf32, #tpu.memory_space<vmem>>, vector<4x256xf32>
    tpu.vector_store %arg9[%c20, %c0_22], %26 {strides = array<i32>} : memref<36x256xf32, #tpu.memory_space<vmem>>, vector<4x256xf32>,
    %c0_23 = arith.constant 0 : index
    %c143 = arith.constant 143 : index
    %28 = vector.load %arg8[%c0_23, %c143] : memref<4x512xf32, #tpu.memory_space<vmem>>, vector<4x256xf32>
    %29 = vector.broadcast %0 : vector<1x256xf32> to vector<4x256xf32>
    %30 = arith.mulf %28, %29 : vector<4x256xf32>
    %c24 = arith.constant 24 : index
    %c0_24 = arith.constant 0 : index
    %31 = vector.load %arg9[%c24, %c0_24] : memref<36x256xf32, #tpu.memory_space<vmem>>, vector<4x256xf32>
    tpu.vector_store %arg9[%c24, %c0_24], %30 {strides = array<i32>} : memref<36x256xf32, #tpu.memory_space<vmem>>, vector<4x256xf32>,
    %c0_25 = arith.constant 0 : index
    %c144 = arith.constant 144 : index
    %32 = vector.load %arg8[%c0_25, %c144] : memref<4x512xf32, #tpu.memory_space<vmem>>, vector<4x256xf32>
    %c28 = arith.constant 28 : index
    %c0_26 = arith.constant 0 : index
    %33 = vector.load %arg9[%c28, %c0_26] : memref<36x256xf32, #tpu.memory_space<vmem>>, vector<4x256xf32>
    tpu.vector_store %arg9[%c28, %c0_26], %32 {strides = array<i32>} : memref<36x256xf32, #tpu.memory_space<vmem>>, vector<4x256xf32>,
    %c0_27 = arith.constant 0 : index
    %c145 = arith.constant 145 : index
    %34 = vector.load %arg8[%c0_27, %c145] : memref<4x512xf32, #tpu.memory_space<vmem>>, vector<4x256xf32>
    %35 = vector.broadcast %1 : vector<1x256xf32> to vector<4x256xf32>
    %36 = arith.mulf %34, %35 : vector<4x256xf32>
    %c32 = arith.constant 32 : index
    %c0_28 = arith.constant 0 : index
    %37 = vector.load %arg9[%c32, %c0_28] : memref<36x256xf32, #tpu.memory_space<vmem>>, vector<4x256xf32>
    tpu.vector_store %arg9[%c32, %c0_28], %36 {strides = array<i32>} : memref<36x256xf32, #tpu.memory_space<vmem>>, vector<4x256xf32>,
    %c0_29 = arith.constant 0 : index
    %c0_30 = arith.constant 0 : index
    %38 = vector.load %arg3[%c0_29, %c0_30] : memref<2x36xf32, #tpu.memory_space<vmem>>, vector<2x36xf32>
    %c0_31 = arith.constant 0 : index
    %c0_32 = arith.constant 0 : index
    %39 = vector.load %arg9[%c0_31, %c0_32] : memref<36x256xf32, #tpu.memory_space<vmem>>, vector<36x256xf32>
    %cst_33 = arith.constant dense<0.000000e+00> : vector<2x256xf32>
    %40 = tpu.matmul %38, %39, %cst_33 {dimension_numbers = #tpu.dot_dimension_numbers<[1], [0], [0], [1], [0, 0, 1, 1], [], []>} : vector<2x36xf32>, vector<36x256xf32>, vector<2x256xf32> -> vector<2x256xf32>
    %c0_34 = arith.constant 0 : index
    %c0_35 = arith.constant 0 : index
    %41 = vector.load %arg4[%c0_34, %c0_35] : memref<2x1xf32, #tpu.memory_space<vmem>>, vector<2x1xf32>
    %42 = vector.broadcast %41 : vector<2x1xf32> to vector<2x256xf32>
    %43 = arith.addf %40, %42 : vector<2x256xf32>
    %cst_36 = arith.constant 0.000000e+00 : f32
    %44 = vector.broadcast %cst_36 : f32 to vector<2x256xf32>
    %45 = arith.maximumf %43, %44 : vector<2x256xf32>
    %cst_37 = arith.constant 0.000000e+00 : f32
    %46 = vector.broadcast %cst_37 : f32 to vector<2x128xf32>
    %c0_38 = arith.constant 0 : index
    %c0_39 = arith.constant 0 : index
    %47 = vector.load %arg10[%c0_38, %c0_39] : memref<2x512xf32, #tpu.memory_space<vmem>>, vector<2x128xf32>
    tpu.vector_store %arg10[%c0_38, %c0_39], %46 {strides = array<i32>} : memref<2x512xf32, #tpu.memory_space<vmem>>, vector<2x128xf32>,
    %c0_40 = arith.constant 0 : index
    %c384_41 = arith.constant 384 : index
    %48 = vector.load %arg10[%c0_40, %c384_41] : memref<2x512xf32, #tpu.memory_space<vmem>>, vector<2x128xf32>
    tpu.vector_store %arg10[%c0_40, %c384_41], %46 {strides = array<i32>} : memref<2x512xf32, #tpu.memory_space<vmem>>, vector<2x128xf32>,
    %c0_42 = arith.constant 0 : index
    %c128_43 = arith.constant 128 : index
    %49 = vector.load %arg10[%c0_42, %c128_43] : memref<2x512xf32, #tpu.memory_space<vmem>>, vector<2x256xf32>
    tpu.vector_store %arg10[%c0_42, %c128_43], %45 {strides = array<i32>} : memref<2x512xf32, #tpu.memory_space<vmem>>, vector<2x256xf32>,
    %c0_44 = arith.constant 0 : index
    %c111_45 = arith.constant 111 : index
    %50 = vector.load %arg10[%c0_44, %c111_45] : memref<2x512xf32, #tpu.memory_space<vmem>>, vector<2x256xf32>
    %51 = vector.broadcast %0 : vector<1x256xf32> to vector<2x256xf32>
    %52 = arith.mulf %50, %51 : vector<2x256xf32>
    %c0_46 = arith.constant 0 : index
    %c0_47 = arith.constant 0 : index
    %53 = vector.load %arg11[%c0_46, %c0_47] : memref<18x256xf32, #tpu.memory_space<vmem>>, vector<2x256xf32>
    tpu.vector_store %arg11[%c0_46, %c0_47], %52 {strides = array<i32>} : memref<18x256xf32, #tpu.memory_space<vmem>>, vector<2x256xf32>,
    %c0_48 = arith.constant 0 : index
    %c112_49 = arith.constant 112 : index
    %54 = vector.load %arg10[%c0_48, %c112_49] : memref<2x512xf32, #tpu.memory_space<vmem>>, vector<2x256xf32>
    %c2_50 = arith.constant 2 : index
    %c0_51 = arith.constant 0 : index
    %55 = vector.load %arg11[%c2_50, %c0_51] : memref<18x256xf32, #tpu.memory_space<vmem>>, vector<2x256xf32>
    tpu.vector_store %arg11[%c2_50, %c0_51], %54 {strides = array<i32>} : memref<18x256xf32, #tpu.memory_space<vmem>>, vector<2x256xf32>,
    %c0_52 = arith.constant 0 : index
    %c113_53 = arith.constant 113 : index
    %56 = vector.load %arg10[%c0_52, %c113_53] : memref<2x512xf32, #tpu.memory_space<vmem>>, vector<2x256xf32>
    %57 = vector.broadcast %1 : vector<1x256xf32> to vector<2x256xf32>
    %58 = arith.mulf %56, %57 : vector<2x256xf32>
    %c4_54 = arith.constant 4 : index
    %c0_55 = arith.constant 0 : index
    %59 = vector.load %arg11[%c4_54, %c0_55] : memref<18x256xf32, #tpu.memory_space<vmem>>, vector<2x256xf32>
    tpu.vector_store %arg11[%c4_54, %c0_55], %58 {strides = array<i32>} : memref<18x256xf32, #tpu.memory_space<vmem>>, vector<2x256xf32>,
    %c0_56 = arith.constant 0 : index
    %c127_57 = arith.constant 127 : index
    %60 = vector.load %arg10[%c0_56, %c127_57] : memref<2x512xf32, #tpu.memory_space<vmem>>, vector<2x256xf32>
    %61 = vector.broadcast %0 : vector<1x256xf32> to vector<2x256xf32>
    %62 = arith.mulf %60, %61 : vector<2x256xf32>
    %c6 = arith.constant 6 : index
    %c0_58 = arith.constant 0 : index
    %63 = vector.load %arg11[%c6, %c0_58] : memref<18x256xf32, #tpu.memory_space<vmem>>, vector<2x256xf32>
    tpu.vector_store %arg11[%c6, %c0_58], %62 {strides = array<i32>} : memref<18x256xf32, #tpu.memory_space<vmem>>, vector<2x256xf32>,
    %c0_59 = arith.constant 0 : index
    %c128_60 = arith.constant 128 : index
    %64 = vector.load %arg10[%c0_59, %c128_60] : memref<2x512xf32, #tpu.memory_space<vmem>>, vector<2x256xf32>
    %c8_61 = arith.constant 8 : index
    %c0_62 = arith.constant 0 : index
    %65 = vector.load %arg11[%c8_61, %c0_62] : memref<18x256xf32, #tpu.memory_space<vmem>>, vector<2x256xf32>
    tpu.vector_store %arg11[%c8_61, %c0_62], %64 {strides = array<i32>} : memref<18x256xf32, #tpu.memory_space<vmem>>, vector<2x256xf32>,
    %c0_63 = arith.constant 0 : index
    %c129_64 = arith.constant 129 : index
    %66 = vector.load %arg10[%c0_63, %c129_64] : memref<2x512xf32, #tpu.memory_space<vmem>>, vector<2x256xf32>
    %67 = vector.broadcast %1 : vector<1x256xf32> to vector<2x256xf32>
    %68 = arith.mulf %66, %67 : vector<2x256xf32>
    %c10 = arith.constant 10 : index
    %c0_65 = arith.constant 0 : index
    %69 = vector.load %arg11[%c10, %c0_65] : memref<18x256xf32, #tpu.memory_space<vmem>>, vector<2x256xf32>
    tpu.vector_store %arg11[%c10, %c0_65], %68 {strides = array<i32>} : memref<18x256xf32, #tpu.memory_space<vmem>>, vector<2x256xf32>,
    %c0_66 = arith.constant 0 : index
    %c143_67 = arith.constant 143 : index
    %70 = vector.load %arg10[%c0_66, %c143_67] : memref<2x512xf32, #tpu.memory_space<vmem>>, vector<2x256xf32>
    %71 = vector.broadcast %0 : vector<1x256xf32> to vector<2x256xf32>
    %72 = arith.mulf %70, %71 : vector<2x256xf32>
    %c12_68 = arith.constant 12 : index
    %c0_69 = arith.constant 0 : index
    %73 = vector.load %arg11[%c12_68, %c0_69] : memref<18x256xf32, #tpu.memory_space<vmem>>, vector<2x256xf32>
    tpu.vector_store %arg11[%c12_68, %c0_69], %72 {strides = array<i32>} : memref<18x256xf32, #tpu.memory_space<vmem>>, vector<2x256xf32>,
    %c0_70 = arith.constant 0 : index
    %c144_71 = arith.constant 144 : index
    %74 = vector.load %arg10[%c0_70, %c144_71] : memref<2x512xf32, #tpu.memory_space<vmem>>, vector<2x256xf32>
    %c14 = arith.constant 14 : index
    %c0_72 = arith.constant 0 : index
    %75 = vector.load %arg11[%c14, %c0_72] : memref<18x256xf32, #tpu.memory_space<vmem>>, vector<2x256xf32>
    tpu.vector_store %arg11[%c14, %c0_72], %74 {strides = array<i32>} : memref<18x256xf32, #tpu.memory_space<vmem>>, vector<2x256xf32>,
    %c0_73 = arith.constant 0 : index
    %c145_74 = arith.constant 145 : index
    %76 = vector.load %arg10[%c0_73, %c145_74] : memref<2x512xf32, #tpu.memory_space<vmem>>, vector<2x256xf32>
    %77 = vector.broadcast %1 : vector<1x256xf32> to vector<2x256xf32>
    %78 = arith.mulf %76, %77 : vector<2x256xf32>
    %c16_75 = arith.constant 16 : index
    %c0_76 = arith.constant 0 : index
    %79 = vector.load %arg11[%c16_75, %c0_76] : memref<18x256xf32, #tpu.memory_space<vmem>>, vector<2x256xf32>
    tpu.vector_store %arg11[%c16_75, %c0_76], %78 {strides = array<i32>} : memref<18x256xf32, #tpu.memory_space<vmem>>, vector<2x256xf32>,
    %c0_77 = arith.constant 0 : index
    %c0_78 = arith.constant 0 : index
    %80 = vector.load %arg5[%c0_77, %c0_78] : memref<8x18xf32, #tpu.memory_space<vmem>>, vector<8x18xf32>
    %c0_79 = arith.constant 0 : index
    %c0_80 = arith.constant 0 : index
    %81 = vector.load %arg11[%c0_79, %c0_80] : memref<18x256xf32, #tpu.memory_space<vmem>>, vector<18x256xf32>
    %cst_81 = arith.constant dense<0.000000e+00> : vector<8x256xf32>
    %82 = tpu.matmul %80, %81, %cst_81 {dimension_numbers = #tpu.dot_dimension_numbers<[1], [0], [0], [1], [0, 0, 1, 1], [], []>} : vector<8x18xf32>, vector<18x256xf32>, vector<8x256xf32> -> vector<8x256xf32>
    %c0_82 = arith.constant 0 : index
    %c0_83 = arith.constant 0 : index
    %83 = vector.load %arg6[%c0_82, %c0_83] : memref<8x1xf32, #tpu.memory_space<vmem>>, vector<8x1xf32>
    %84 = vector.broadcast %83 : vector<8x1xf32> to vector<8x256xf32>
    %85 = arith.addf %82, %84 : vector<8x256xf32>
    %cst_84 = arith.constant 0.000000e+00 : f32
    %86 = vector.broadcast %cst_84 : f32 to vector<8x256xf32>
    %87 = arith.maximumf %85, %86 : vector<8x256xf32>
    %c0_85 = arith.constant 0 : index
    %c0_86 = arith.constant 0 : index
    %c0_87 = arith.constant 0 : index
    %88 = vector.load %arg7[%c0_85, %c0_86, %c0_87] : memref<1x8x256xf32, #tpu.memory_space<vmem>>, vector<1x8x256xf32>
    %89 = vector.shape_cast %88 : vector<1x8x256xf32> to vector<8x256xf32>
    %90 = vector.shape_cast %87 : vector<8x256xf32> to vector<1x8x256xf32>
    tpu.vector_store %arg7[%c0_85, %c0_86, %c0_87], %90 {strides = array<i32>} : memref<1x8x256xf32, #tpu.memory_space<vmem>>, vector<1x8x256xf32>,
    return
  }
  func.func @transform_0(%arg0: i32) -> (i32, i32, i32) {
    %c0_i32 = arith.constant 0 : i32
    %c0_i32_0 = arith.constant 0 : i32
    %c0_i32_1 = arith.constant 0 : i32
    return %arg0, %c0_i32, %c0_i32_0 : i32, i32, i32
  }
  func.func @transform_1(%arg0: i32) -> (i32, i32) {
    %c0_i32 = arith.constant 0 : i32
    %c0_i32_0 = arith.constant 0 : i32
    %c0_i32_1 = arith.constant 0 : i32
    return %c0_i32, %c0_i32_0 : i32, i32
  }
  func.func @transform_2(%arg0: i32) -> (i32, i32) {
    %c0_i32 = arith.constant 0 : i32
    %c0_i32_0 = arith.constant 0 : i32
    %c0_i32_1 = arith.constant 0 : i32
    return %c0_i32, %c0_i32_0 : i32, i32
  }
  func.func @transform_3(%arg0: i32) -> (i32, i32) {
    %c0_i32 = arith.constant 0 : i32
    %c0_i32_0 = arith.constant 0 : i32
    %c0_i32_1 = arith.constant 0 : i32
    return %c0_i32, %c0_i32_0 : i32, i32
  }
  func.func @transform_4(%arg0: i32) -> (i32, i32) {
    %c0_i32 = arith.constant 0 : i32
    %c0_i32_0 = arith.constant 0 : i32
    %c0_i32_1 = arith.constant 0 : i32
    return %c0_i32, %c0_i32_0 : i32, i32
  }
  func.func @transform_5(%arg0: i32) -> (i32, i32) {
    %c0_i32 = arith.constant 0 : i32
    %c0_i32_0 = arith.constant 0 : i32
    %c0_i32_1 = arith.constant 0 : i32
    return %c0_i32, %c0_i32_0 : i32, i32
  }
  func.func @transform_6(%arg0: i32) -> (i32, i32, i32) {
    %c0_i32 = arith.constant 0 : i32
    %c0_i32_0 = arith.constant 0 : i32
    %c0_i32_1 = arith.constant 0 : i32
    return %arg0, %c0_i32, %c0_i32_0 : i32, i32, i32
  }
}

</mosaic_0001>

<bundles_post_ra>
// kernel: tpu_custom_call.1
= control target key start
LH: loop header
LB: loop body
LE: loop exit
PB: predicated region body
PF: predicated region fallthrough
CT: control target
= control target key end

     0   :  { %11 = vsyncpa [#allocation7], 0  ;;  %s1574_s0 = inlined_call_operand.hbm [shape: f32[2,4,256], index: 0, kind: input, shape index: {}]   ;;  %s1575_s1 = inlined_call_operand.vmem [shape: f32[3,256], index: 1, kind: input, shape index: {}]   ;;  %s1576_s2 = inlined_call_operand.vmem [shape: f32[2,36], index: 2, kind: input, shape index: {}]   ;;  %s1577_s3 = inlined_call_operand.vmem [shape: f32[2,1], index: 3, kind: input, shape index: {}]   ;;  %s1578_s4 = inlined_call_operand.hbm [shape: f32[8,18], index: 4, kind: input, shape index: {}]   ;;  %s1579_s5 = inlined_call_operand.vmem [shape: f32[8,1], index: 5, kind: input, shape index: {}]   ;;  %s1580_s6 = inlined_call_operand.hbm [shape: f32[2,8,256], index: 6, kind: output, shape index: {}]  }
   0x1   :  { %13 = vsyncpa [#allocation7 + $0x1], 0 }
   0x2   :  { %14 = vsyncpa [#allocation10], 0 }
   0x3   :  { %15 = vsyncpa [#allocation8], 0 }
   0x4   :  { %17 = vsyncpa [#allocation8 + $0x1], 0  ;;  %s1263_s21 = smov 0   ;;  %s1265_s22 = smov 0  }
   0x5   :  { %s1267_s23 = smov 0   ;;  %s1269_s24 = smov 0  }
   0x6 LB: > { %s1284_s25 = sadd.s32 4294967295, %s1215_s24   ;;  %s989_s26 = sadd.s32 4294967294, %s1215_s24   ;;  %s1215_s24 = sphi %s1269_s24, %s1590_s24   ;;  %s1211_s23 = sphi %s1267_s23, %s1589_s23   ;;  %s1207_s22 = sphi %s1265_s22, %s1588_s22   ;;  %s1203_s21 = sphi %s1263_s21, %s1587_s21  }
   0x7   : > { %p43_p0 = scmp.ne.s32.totalorder %s1207_s22, %s1203_s21  ;;  %p44_p1 = scmp.eq.s32.totalorder %s1284_s25, 0 }
   0x8   : > { %p172_p2 = scmp.eq.s32.totalorder %s1284_s25, 1  ;;  %p178_p3 = scmp.eq.s32.totalorder %s989_s26, 1 }
   0x9   : > { %p1293_p4 = por %p44_p1, %p43_p0  ;;  %p990_p5 = scmp.ge.s32.totalorder %s1215_s24, 1 }
   0xa   : > { %p1298_p6 = por %p178_p3, %p43_p0  ;;  %p185_p7 = scmp.lt.s32.totalorder %s1215_s24, 3 }
   0xb   : > { %s206_s7 = sshll.u32 %s1578_s4, 4  ;;  %s1217_s9 = smov [#allocation9]   ;;  %s207_s7 = int_to_ptr.hbm [resolvable:$true] %s206_s7 }
   0xc   : > { %p1306_p8 = pnand %p990_p5, %p185_p7  ;;  %s208_s10 = sshll.u32 %s1217_s9, 4  ;;  %s209_s10 = int_to_ptr.vmem [resolvable:$true] %s208_s10 }
   0xd   : > { %s1316_s11 = sadd.s32 1, %s1215_s24   ;;  %s30_s12 = sadd.s32 1, %s1211_s23 }
   0xe   : > { %p1024_p10 = pneg %p1306_p8  ;;  %s27_s13 = ssub.s32 %s1215_s24, %s1316_s11 }
   0xf   : > { %p28_p12 = scmp.eq.s32.totalorder %s27_s13, 0  ;;  %p37_p13 = scmp.ne.s32.totalorder %s1211_s23, %s1207_s22 }
  0x10   : > { %p1025_p11 = pnand %p1024_p10, %p44_p1  ;;  %p38_p0 = scmp.eq.s32.totalorder %s1215_s24, 0 }
  0x11   : > { %s1325_s14 = scalar_select %p28_p12, %s1211_s23, %s30_s12  }
  0x12   : > { %1027 = dma.hbm_to_vmem [thread:$0]  (!%p1025_p11), %s207_s7, 128, %s209_s10, [#allocation10]  }
  0x13   : > { %p1329_p3 = por %p172_p2, %p37_p13  ;;  %p1037_p5 = scmp.lt.s32.totalorder %s1215_s24, 2 }
  0x14   : > { %s222_s16 = sand.u32 1, %s1211_s23   ;;  %s1014_s17 = sshll.u32 %s1215_s24, 3 }
  0x15   : > { %p39_p7 = por %p38_p0, %p37_p13  ;;  %s993_s18 = sshll.u32 %s222_s16, 3 }
  0x16   : > { %s231_s26 = scalar_lea.hbm %s1574_s0, %s1014_s17  ;;  %s226_s30 = scalar_lea.vmem [#allocation6], %s993_s18 }
  0x17   : > { %s233_s29 = sshll.u32 %s231_s26, 4  ;;  %s235_s7 = sshll.u32 %s226_s30, 4  ;;  %s234_s29 = int_to_ptr.hbm [resolvable:$true] %s233_s29  ;;  %s236_s7 = int_to_ptr.vmem [resolvable:$true] %s235_s7 }
  0x18   : > { %p1339_p10 = pnand %p1037_p5, %p39_p7  ;;  %s223_s10 = scalar_lea.sflag [#allocation7], %s222_s16 }
  0x19   : > { %s1115_s12 = sshra.s32 %s234_s29, 4  ;;  %s1122_s18 = scalar_lea.hbm %s1574_s0, 16  ;;  %s1116_s12 = int_to_ptr.hbm [resolvable:$true] %s1115_s12 }
  0x1a   : > { %s1117_s13 = scalar_lea.hbm %s1116_s12, 8  ;;  %p1119_p11 = pneg %p1339_p10 }
  0x1b   : > { %p1118_p2 = scmp.ne.s32.totalorder %s1116_s12, %s1117_s13  ;;  %p1123_p0 = scmp.lt.s32.totalorder %s1116_s12, %s1574_s0 }
  0x1c   : > { %p1124_p5 = scmp.lt.s32.totalorder %s1122_s18, %s1117_s13 }
  0x1d   : > { %p1120_p12 = pnand %p1119_p11, %p1118_p2 }
  0x1e   : > { %p1125_p7 = por %p1124_p5, %p1123_p0 }
  0x1f   : > { %p1121_p13 = pneg %p1120_p12 }
  0x21   : > { %p1126_p9 = pnand %p1125_p7, %p1121_p13 }
  0x23   : > { %1129 = shalt.err (!%p1126_p9)
}
  0x24   : > { %1031 = dma.hbm_to_vmem [thread:$0]  (!%p1339_p10), %s234_s29, 128, %s236_s7, %s223_s10  }
  0x25   : > { %244 = sbr.rel (%p1306_p8) target bundleno = 882 (0x372), region = 44  ;;  %s1356_s16 = sand.u32 (!%p1306_p8), 1, %s1207_s22  }
  0x26   : > { %s997_s30 = sshll.u32 (!%p1306_p8), %s1356_s16, 3  ;;  %s247_s17 = scalar_lea.sflag (!%p1306_p8), [#allocation7], %s1356_s16 }
  0x27   : > { %s250_s19 = scalar_lea.vmem (!%p1306_p8), [#allocation6], %s997_s30 }
  0x2a   : > { %1190 = dma.done.wait (%p1293_p4), %s247_s17, 128  }
  0x2b   : > { %1192 = vsyncadd (%p1293_p4), %s247_s17, 4294967168 }
  0x2c   : > { %1194 = dma.done.wait (%p44_p1), [#allocation10], 128  }
  0x2d   : > { %1196 = vsyncadd (%p44_p1), [#allocation10], 4294967168  ;;  %v1218_v0 = vmov 0.0   ;;  %v1371_v1 = vld [vmem:[%s1575_s1] ss:$4 sm:$0x3] }
  0x2e   : > { %288 = vst [vmem:[#allocation2] sm:$0xf] %v1218_v0  ;;  %v1376_v2 = vld [vmem:[%s1575_s1 + $0x2] ss:$4 sm:$0x3]  ;;  %v295_v3 = vperm.slane %v1371_v1, 0 }
  0x2f   : > { %289 = vst [vmem:[#allocation2 + $0xc] sm:$0xf] %v1218_v0  ;;  %v296_v4 = vperm.slane %v1371_v1, 1  ;;  %v1380_v5 = vld [vmem:[%s250_s19] sm:$0xff]  ;;  %vm298_vm0 = vcmask 1043456   ;;  %v358_v7 = vperm.slane %v1376_v2, 1 }
  0x30   : > { %617 = vst [vmem:[#allocation4] sm:$0x3] %v1218_v0  ;;  %s1219_s27 = smov 111   ;;  %s1220_s10 = smov 127   ;;  %v357_v9 = vperm.slane %v1376_v2, 0  ;;  %vm303_vm1 = vcmask 908288  }
  0x31   : > { %618 = vst [vmem:[#allocation4 + $0x6] sm:$0x3] %v1218_v0  ;;  %v297_v6 = vrot.slane %v296_v4, 4  ;;  %v359_v10 = vrot.slane %v358_v7, 4  ;;  %s1221_s12 = smov 15   ;;  %s1222_s13 = smov 113  }
  0x32   : > { %291 = vst [vmem:[#allocation2 + $0x4] sm:$0xff] %v1380_v5  ;;  %s1223_s18 = smov 1   ;;  %s1224_s20 = smov 17   ;;  %vm364_vm2 = vcmask 924672   ;;  %vm396_vm3 = vcmask 1039360   ;;  %vm417_vm4 = vcmask 7168  }
  0x33   : > { %v299_v8 = vsel %vm298_vm0, %v295_v3, %v297_v6  ;;  %v360_v11 = vsel %vm298_vm0, %v357_v9, %v359_v10  ;;  %s1225_s26 = smov 16   ;;  %vm384_vm5 = vcmask 121856   ;;  %vm323_vm6 = vcmask 138240   ;;  %s1226_s30 = smov 112  }
  0x34   : > { %300 = vrot.lane.b32.xlu0 %v299_v8, %s1219_s27  ;;  %393 = vrot.lane.b32.xlu1 %v299_v8, %s1220_s10  ;;  %vm347_vm7 = vcmask 130048   ;;  %vm511_vm8 = vcmask 916480   ;;  %vm622_vm9 = vcmask 1041408   ;;  %vm565_vm10 = vcmask 293888   ;;  %s1165_s7 = scalar_lea.hbm %s1580_s6, 32 }
  0x35   : > { %466 = vrot.lane.b32.xlu2 %v299_v8, %s1221_s12  ;;  %vm838_vm11 = vcmask 146432  }
  0x36   : > { %v434_v43 = vld [vmem:[#allocation2 + $0xc] sm:$0xf] }
  0x37   : > { %v465_v50 = vld [vmem:[#allocation2 + $0xc] sm:$0xf] }
  0x38   : > { %v495_v58 = vld [vmem:[#allocation2 + $0xc] sm:$0xf] }
  0x39   : > { %v293_v12 = vld [vmem:[#allocation2 + $0x8] sm:$0xf]  ;;  %v292_v14 = vld [vmem:[#allocation2] sm:$0xff]  ;;  %v519_v6 = vld [vmem:[#allocation2 + $0xc] sm:$0xf] }
  0x3a   : > { %v331_v20 = vld [vmem:[#allocation2 + $0x8] sm:$0xf] }
  0x3b   : > { %v355_v25 = vld [vmem:[#allocation2 + $0x8] sm:$0xf] }
  0x3c   : > { %361 = vrot.lane.b32.xlu0 %v360_v11, %s1222_s13  ;;  %435 = vrot.lane.b32.xlu1 %v360_v11, %s1223_s18  ;;  %v392_v34 = vld [vmem:[#allocation2 + $0x8] sm:$0xf] }
  0x3d   : > { %520 = vrot.lane.b32.xlu2 %v360_v11, %s1224_s20 }
  0x8f   : > { %v467_v45 = vpop.permute.xlu2 %466 }
  0x90   : > { %v468_v49 = vrot.slane %v467_v45, 4 }
  0x92   : > { %v473_v52 = vmul.f32 %v468_v49, %v465_v50  ;;  %v469_v57 = vsel %vm384_vm5, %v468_v49, %v467_v45  ;;  %v672_v49 = vrot.slane %v358_v7, 6  ;;  %v1227_v50 = vmov 0  }
  0x93   : > { %v472_v59 = vmul.f32 %v469_v57, %v1380_v5  ;;  %1083 = vset.pattern.permute.xlu0 %v1227_v50  ;;  %1084 = vset.pattern.permute.xlu2 %v1227_v50 }
  0x97   : > { %v521_v60 = vpop.permute.xlu2 %520 }
  0x98   : > { %v522_v0 = vrot.slane %v521_v60, 4 }
  0x9a   : > { %v527_v8 = vmul.f32 %v522_v0, %v519_v6 }
  0xa6   : > { %v301_v13 = vpop.permute.xlu0 %300  ;;  %v394_v27 = vpop.permute.xlu1 %393 }
  0xa7   : > { %v302_v15 = vrot.slane %v301_v13, 4  ;;  %v395_v30 = vrot.slane %v394_v27, 4 }
  0xa9   : > { %v304_v16 = vsel %vm303_vm1, %v302_v15, %v301_v13  ;;  %v308_v17 = vmul.f32 %v302_v15, %v293_v12  ;;  %v397_v35 = vsel %vm396_vm3, %v395_v30, %v394_v27  ;;  %v401_v36 = vmul.f32 %v395_v30, %v392_v34 }
  0xaa   : > { %v307_v18 = vmul.f32 %v304_v16, %v292_v14  ;;  %v400_v37 = vmul.f32 %v397_v35, %v292_v14  ;;  %v523_v13 = vsel %vm323_vm6, %v522_v0, %v521_v60 }
  0xab   : > { %313 = vst [vmem:[#allocation1 + $0x10] ss:$2 sm:$0xff] %v308_v17 }
  0xac   : > { %311 = vst [vmem:[#allocation1] ss:$2 sm:$0xff] %v307_v18 }
  0xae   : > { %v362_v19 = vpop.permute.xlu0 %361  ;;  %v436_v38 = vpop.permute.xlu1 %435 }
  0xaf   : > { %v363_v22 = vrot.slane %v362_v19, 4  ;;  %v437_v42 = vrot.slane %v436_v38, 4 }
  0xb1   : > { %v365_v26 = vsel %vm364_vm2, %v363_v22, %v362_v19  ;;  %v369_v28 = vmul.f32 %v363_v22, %v355_v25  ;;  %v442_v44 = vmul.f32 %v437_v42, %v434_v43  ;;  %v438_v51 = vsel %vm417_vm4, %v437_v42, %v436_v38 }
  0xb2   : > { %v316_v21 = vld.sshfl [vmem:[#allocation1 + $0x10] sm:$0xff pattern:$0x75316420]  ;;  %v368_v29 = vmul.f32 %v365_v26, %v292_v14  ;;  %v441_v53 = vmul.f32 %v438_v51, %v1380_v5 }
  0xb3   : > { %v1402_v23 = vld.sshfl [vmem:[#allocation1] sm:$0xff pattern:$0x75316420]  ;;  %v315_v24 = vld.sshfl [vmem:[#allocation1 + $0x8] sm:$0xff pattern:$0x75316420]  ;;  %321 = vrot.lane.b32.xlu2 %v316_v21, %s1224_s20 }
  0xb4   : > { %335 = vst [vmem:[#allocation1 + $0x1] ss:$2 sm:$0xff] %v292_v14  ;;  %319 = vrot.lane.b32.xlu1 %v315_v24, %s1224_s20  ;;  %v526_v14 = vmul.f32 %v523_v13, %v1380_v5 }
  0xb5   : > { %337 = vst [vmem:[#allocation1 + $0x11] ss:$2 sm:$0xff] %v331_v20 }
  0xbb   : > { %v1407_v31 = vld.sshfl [vmem:[#allocation1] sm:$0xff pattern:$0x75316420]  ;;  %v339_v32 = vld.sshfl [vmem:[#allocation1 + $0x8] sm:$0xff pattern:$0x75316420] }
  0xbc   : > { %v340_v33 = vld.sshfl [vmem:[#allocation1 + $0x10] sm:$0xff pattern:$0x75316420]  ;;  %372 = vst [vmem:[#allocation1] ss:$2 sm:$0xff] %v368_v29  ;;  %343 = vrot.lane.b32.xlu0 %v339_v32, %s1225_s26 }
  0xbd   : > { %374 = vst [vmem:[#allocation1 + $0x10] ss:$2 sm:$0xff] %v369_v28  ;;  %345 = vrot.lane.b32.xlu1 %v340_v33, %s1225_s26 }
  0xc3   : > { %v375_v39 = vld.sshfl [vmem:[#allocation1] sm:$0xff pattern:$0x75316420]  ;;  %v376_v40 = vld.sshfl [vmem:[#allocation1 + $0x8] sm:$0xff pattern:$0x75316420] }
  0xc4   : > { %v377_v41 = vld.sshfl [vmem:[#allocation1 + $0x10] sm:$0xff pattern:$0x75316420]  ;;  %405 = vst [vmem:[#allocation1 + $0x1] ss:$2 sm:$0xff] %v400_v37  ;;  %380 = vrot.lane.b32.xlu2 %v376_v40, %s1221_s12 }
  0xc5   : > { %407 = vst [vmem:[#allocation1 + $0x11] ss:$2 sm:$0xff] %v401_v36  ;;  %382 = vrot.lane.b32.xlu0 %v377_v41, %s1221_s12 }
  0xcb   : > { %v408_v46 = vld.sshfl [vmem:[#allocation1] sm:$0xff pattern:$0x75316420]  ;;  %v409_v47 = vld.sshfl [vmem:[#allocation1 + $0x8] sm:$0xff pattern:$0x75316420] }
  0xcc   : > { %v410_v48 = vld.sshfl [vmem:[#allocation1 + $0x10] sm:$0xff pattern:$0x75316420]  ;;  %378 = vrot.lane.b32.xlu2 %v375_v39, %s1221_s12  ;;  %413 = vrot.lane.b32.xlu1 %v409_v47, %s1223_s18  ;;  %426 = vst [vmem:[#allocation1] ss:$2 sm:$0xff] %v1380_v5  ;;  %v627_v47 = vrot.slane %v296_v4, 6  ;;  %v673_v4 = vsel %vm622_vm9, %v357_v9, %v672_v49 }
  0xcd   : > { %448 = vst [vmem:[#allocation1 + $0x11] ss:$2 sm:$0xff] %v442_v44 }
  0xd3   : > { %v427_v54 = vld.sshfl [vmem:[#allocation1] sm:$0xff pattern:$0x75316420]  ;;  %v428_v55 = vld.sshfl [vmem:[#allocation1 + $0x8] sm:$0xff pattern:$0x75316420] }
  0xd4   : > { %v451_v56 = vld.sshfl [vmem:[#allocation1 + $0x10] sm:$0xff pattern:$0x75316420]  ;;  %415 = vrot.lane.b32.xlu2 %v410_v48, %s1223_s18  ;;  %446 = vst [vmem:[#allocation1 + $0x1] ss:$2 sm:$0xff] %v441_v53  ;;  %v628_v53 = vsel %vm622_vm9, %v295_v3, %v627_v47 }
  0xd5   : > { %478 = vst [vmem:[#allocation1 + $0x10] ss:$2 sm:$0xff] %v473_v52  ;;  %v559_v48 = vld [vmem:[%s1577_s3] sm:$0x3] }
  0xd6   : > { %431 = vst [vmem:[#allocation3 + $0x48] sm:$0xf] %v427_v54 }
  0xd7   : > { %432 = vst [vmem:[#allocation3 + $0x28] sm:$0xf] %v428_v55 }
  0xdb   : > { %v450_v61 = vld.sshfl [vmem:[#allocation1 + $0x8] sm:$0xff pattern:$0x75316420]  ;;  %v449_v62 = vld.sshfl [vmem:[#allocation1] sm:$0xff pattern:$0x75316420] }
  0xdc   : > { %v481_v63 = vld.sshfl [vmem:[#allocation1 + $0x10] sm:$0xff pattern:$0x75316420]  ;;  %456 = vrot.lane.b32.xlu2 %v451_v56, %s1220_s10  ;;  %454 = vrot.lane.b32.xlu1 %v450_v61, %s1220_s10  ;;  %476 = vst [vmem:[#allocation1] ss:$2 sm:$0xff] %v472_v59 }
  0xdd   : > { %486 = vrot.lane.b32.xlu0 %v481_v63, %s1222_s13  ;;  %501 = vst [vmem:[#allocation1 + $0x11] ss:$2 sm:$0xff] %v495_v58  ;;  %v548_v63 = vld [vmem:[%s1576_s2] sm:$0x3] }
  0xe3   : > { %v479_v10 = vld.sshfl [vmem:[#allocation1] sm:$0xff pattern:$0x75316420]  ;;  %v480_v11 = vld.sshfl [vmem:[#allocation1 + $0x8] sm:$0xff pattern:$0x75316420] }
  0xe4   : > { %v504_v12 = vld.sshfl [vmem:[#allocation1 + $0x10] sm:$0xff pattern:$0x75316420]  ;;  %499 = vst [vmem:[#allocation1 + $0x1] ss:$2 sm:$0xff] %v1380_v5 }
  0xe5   : > { %452 = vrot.lane.b32.xlu0 %v449_v62, %s1220_s10  ;;  %509 = vrot.lane.b32.xlu2 %v504_v12, %s1226_s30  ;;  %532 = vst [vmem:[#allocation1 + $0x10] ss:$2 sm:$0xff] %v527_v8 }
  0xeb   : > { %v502_v15 = vld.sshfl [vmem:[#allocation1] sm:$0xff pattern:$0x75316420]  ;;  %v503_v16 = vld.sshfl [vmem:[#allocation1 + $0x8] sm:$0xff pattern:$0x75316420] }
  0xec   : > { %v535_v17 = vld.sshfl [vmem:[#allocation1 + $0x10] sm:$0xff pattern:$0x75316420]  ;;  %530 = vst [vmem:[#allocation1] ss:$2 sm:$0xff] %v526_v14 }
  0xed   : > { %540 = vrot.lane.b32.xlu1 %v535_v17, %s1219_s27  ;;  %482 = vrot.lane.b32.xlu0 %v479_v10, %s1222_s13 }
  0xee   : > { %484 = vrot.lane.b32.xlu2 %v480_v11, %s1222_s13 }
  0xf3   : > { %v534_v18 = vld.sshfl [vmem:[#allocation1 + $0x8] sm:$0xff pattern:$0x75316420]  ;;  %v533_v19 = vld.sshfl [vmem:[#allocation1] sm:$0xff pattern:$0x75316420] }
  0xf5   : > { %507 = vrot.lane.b32.xlu1 %v503_v16, %s1226_s30  ;;  %538 = vrot.lane.b32.xlu0 %v534_v18, %s1219_s27 }
  0xf6   : > { %341 = vrot.lane.b32.xlu2 %v1407_v31, %s1225_s26 }
  0xfd   : > { %505 = vrot.lane.b32.xlu1 %v502_v15, %s1226_s30  ;;  %536 = vrot.lane.b32.xlu0 %v533_v19, %s1219_s27 }
  0xfe   : > { %674 = vrot.lane.b32.xlu2 %v673_v4, %s1222_s13 }
 0x105   : > { %317 = vrot.lane.b32.xlu1 %v1402_v23, %s1224_s20  ;;  %411 = vrot.lane.b32.xlu0 %v408_v46, %s1223_s18 }
 0x106   : > { %733 = vrot.lane.b32.xlu2 %v673_v4, %s1223_s18 }
 0x10d   : > { %v322_v5 = vpop.permute.xlu2 %321  ;;  %562 = vperm.xlu0 %1083, %v559_v48   ;;  %629 = vrot.lane.b32.xlu1 %v628_v53, %s1219_s27 }
 0x115   : > { %758 = vrot.lane.b32.xlu0 %v628_v53, %s1221_s12  ;;  %699 = vrot.lane.b32.xlu1 %v628_v53, %s1220_s10 }
 0x11d   : > { %802 = vrot.lane.b32.xlu1 %v673_v4, %s1224_s20 }
 0x11e   : > { %v381_v20 = vpop.permute.xlu2 %380 }
 0x126   : > { %v1442_v21 = vpop.permute.xlu1 %319  ;;  %v379_v22 = vpop.permute.xlu2 %378 }
 0x127   : > { %v325_v24 = vsel %vm323_vm6, %v1442_v21, %v322_v5  ;;  %v385_v25 = vsel %vm384_vm5, %v379_v22, %v381_v20 }
 0x128   : > { %329 = vst [vmem:[#allocation3] sm:$0xf] %v325_v24 }
 0x129   : > { %389 = vst [vmem:[#allocation3 + $0x18] sm:$0xf] %v385_v25 }
 0x12e   : > { %v416_v26 = vpop.permute.xlu2 %415  ;;  %v344_v27 = vpop.permute.xlu0 %343 }
 0x12f   : > { %v346_v28 = vpop.permute.xlu1 %345 }
 0x130   : > { %v349_v23 = vsel %vm347_vm7, %v344_v27, %v346_v28 }
 0x131   : > { %353 = vst [vmem:[#allocation3] sm:$0xf0] %v349_v23 }
 0x136   : > { %v457_v29 = vpop.permute.xlu2 %456 }
 0x137   : > { %v383_v30 = vpop.permute.xlu0 %382 }
 0x138   : > { %v386_v31 = vsel %vm384_vm5, %v381_v20, %v383_v30  ;;  %v550_v6 = vld [vmem:[#allocation3] sm:$0xff] }
 0x139   : > { %390 = vst [vmem:[#allocation3 + $0x10] sm:$0xf] %v386_v31 }
 0x13e   : > { %v414_v32 = vpop.permute.xlu1 %413 }
 0x13f   : > { %v510_v33 = vpop.permute.xlu2 %509  ;;  %v419_v34 = vsel %vm417_vm4, %v414_v32, %v416_v26 }
 0x140   : > { %423 = vst [vmem:[#allocation3 + $0x10] sm:$0xf0] %v419_v34 }
 0x147   : > { %v552_v59 = vld [vmem:[#allocation3 + $0x10] sm:$0xff] }
 0x148   : > { %v485_v35 = vpop.permute.xlu2 %484 }
 0x14e   : > { %v455_v36 = vpop.permute.xlu1 %454 }
 0x14f   : > { %v487_v37 = vpop.permute.xlu0 %486  ;;  %v459_v38 = vsel %vm396_vm3, %v455_v36, %v457_v29 }
 0x150   : > { %v489_v39 = vsel %vm364_vm2, %v485_v35, %v487_v37  ;;  %463 = vst [vmem:[#allocation3 + $0x28] sm:$0xf0] %v459_v38  ;;  %v342_v40 = vpop.permute.xlu2 %341 }
 0x151   : > { %493 = vst [vmem:[#allocation3 + $0x20] sm:$0xf] %v489_v39  ;;  %v348_v41 = vsel %vm347_vm7, %v342_v40, %v344_v27 }
 0x152   : > { %352 = vst [vmem:[#allocation3 + $0x30] sm:$0xf0] %v348_v41 }
 0x157   : > { %v453_v42 = vpop.permute.xlu0 %452  ;;  %v554_v57 = vld [vmem:[#allocation3 + $0x28] sm:$0xff] }
 0x158   : > { %v458_v43 = vsel %vm396_vm3, %v453_v42, %v455_v36  ;;  %v675_v23 = vpop.permute.xlu2 %674 }
 0x159   : > { %462 = vst [vmem:[#allocation3 + $0x48] sm:$0xf0] %v458_v43  ;;  %v676_v31 = vrot.slane %v675_v23, 6 }
 0x15f   : > { %v541_v44 = vpop.permute.xlu1 %540  ;;  %v483_v45 = vpop.permute.xlu0 %482 }
 0x160   : > { %v488_v46 = vsel %vm364_vm2, %v483_v45, %v485_v35  ;;  %v553_v10 = vld [vmem:[#allocation3 + $0x48] sm:$0xff] }
 0x161   : > { %492 = vst [vmem:[#allocation3 + $0x8] sm:$0xf] %v488_v46  ;;  %v734_v46 = vpop.permute.xlu2 %733 }
 0x162   : > { %v735_v50 = vrot.slane %v734_v46, 6 }
 0x164   : > { %v736_v53 = vsel %vm417_vm4, %v735_v50, %v734_v46 }
 0x167   : > { %v508_v51 = vpop.permute.xlu1 %507  ;;  %v539_v52 = vpop.permute.xlu0 %538 }
 0x168   : > { %v513_v54 = vsel %vm511_vm8, %v508_v51, %v510_v33  ;;  %v543_v55 = vsel %vm303_vm1, %v539_v52, %v541_v44  ;;  %v677_v33 = vsel %vm364_vm2, %v676_v31, %v675_v23 }
 0x169   : > { %517 = vst [vmem:[#allocation3 + $0x20] sm:$0xf0] %v513_v54 }
 0x16a   : > { %547 = vst [vmem:[#allocation3 + $0x38] sm:$0xf] %v543_v55 }
 0x16f   : > { %v506_v7 = vpop.permute.xlu1 %505  ;;  %v537_v56 = vpop.permute.xlu0 %536 }
 0x170   : > { %v512_v1 = vsel %vm511_vm8, %v506_v7, %v508_v51  ;;  %v542_v2 = vsel %vm303_vm1, %v537_v56, %v539_v52  ;;  %v556_v9 = vld [vmem:[#allocation3 + $0x20] sm:$0xff] }
 0x171   : > { %516 = vst [vmem:[#allocation3 + $0x8] sm:$0xf0] %v512_v1  ;;  %v558_v3 = vld [vmem:[#allocation3 + $0x38] sm:$0xf] }
 0x172   : > { %546 = vst [vmem:[#allocation3 + $0x40] sm:$0xf] %v542_v2  ;;  %1003 = vmatpush.msk.msra.mxu1 %vm298_vm0, %v558_v3 }
 0x174   : > { %607 = vmatpush.msra.mxu1 %v556_v9 }
 0x176   : > { %608 = vmatpush.msra.mxu1 %v554_v57 }
 0x177   : > { %v318_v58 = vpop.permute.xlu1 %317  ;;  %v412_v60 = vpop.permute.xlu0 %411 }
 0x178   : > { %v324_v61 = vsel %vm323_vm6, %v318_v58, %v1442_v21  ;;  %609 = vmatpush.msra.mxu1 %v552_v59  ;;  %v418_v62 = vsel %vm417_vm4, %v412_v60, %v414_v32  ;;  %v555_v8 = vld [vmem:[#allocation3 + $0x8] sm:$0xff] }
 0x179   : > { %328 = vst [vmem:[#allocation3 + $0x30] sm:$0xf] %v324_v61  ;;  %v557_v0 = vld [vmem:[#allocation3 + $0x40] sm:$0xf] }
 0x17a   : > { %422 = vst [vmem:[#allocation3 + $0x18] sm:$0xf0] %v418_v62  ;;  %1001 = vmatpush.msk.msra.mxu0 %vm298_vm0, %v557_v0  ;;  %610 = vmatpush.msra.mxu1 %v550_v6 }
 0x17b   : > { %1004 = vmatmul.msk.f32.vlgmr.msra.gmra.mxu1 %vm565_vm10, %v548_v63 }
 0x17c   : > { %587 = vmatpush.msra.mxu0 %v555_v8 }
 0x17e   : > { %588 = vmatpush.msra.mxu0 %v553_v10 }
 0x17f   : > { %v563_v14 = vpop.permute.xlu0 %562  ;;  %v630_v21 = vpop.permute.xlu1 %629 }
 0x180   : > { %v549_v12 = vld [vmem:[#allocation3 + $0x30] sm:$0xff]  ;;  %v631_v22 = vrot.slane %v630_v21, 6 }
 0x181   : > { %v551_v11 = vld [vmem:[#allocation3 + $0x18] sm:$0xff] }
 0x182   : > { %589 = vmatpush.msra.mxu0 %v551_v11  ;;  %v632_v24 = vsel %vm303_vm1, %v631_v22, %v630_v21 }
 0x184   : > { %590 = vmatpush.msra.mxu0 %v549_v12 }
 0x185   : > { %1002 = vmatmul.msk.f32.vlgmr.msra.gmra.mxu0 %vm565_vm10, %v548_v63 }
 0x187   : > { %v700_v37 = vpop.permute.xlu1 %699  ;;  %v759_v4 = vpop.permute.xlu0 %758 }
 0x188   : > { %v701_v39 = vrot.slane %v700_v37, 6  ;;  %v760_v56 = vrot.slane %v759_v4, 6 }
 0x18a   : > { %v702_v41 = vsel %vm396_vm3, %v701_v39, %v700_v37  ;;  %v761_v2 = vsel %vm384_vm5, %v760_v56, %v759_v4 }
 0x18f   : > { %v803_v59 = vpop.permute.xlu1 %802 }
 0x190   : > { %v804_v0 = vrot.slane %v803_v59, 6 }
 0x192   : > { %v805_v8 = vsel %vm323_vm6, %v804_v0, %v803_v59 }
 0x1f8   : > { %v612_v13 = vpop.f32.mrf.mxu1 }
 0x1f9   : > { %v613_v15 = vadd.f32 %v612_v13, %v563_v14 }
 0x1fb   : > { %v616_v16 = vmax.f32 %v613_v15, 0.0 }
 0x1fd   : > { %v621_v18 = vrot.slane %v616_v16, 6 }
 0x202   : > { %v592_v17 = vpop.f32.mrf.mxu0 }
 0x203   : > { %v593_v19 = vadd.f32 %v592_v17, %v563_v14 }
 0x205   : > { %v615_v5 = vmax.f32 %v593_v19, 0.0 }
 0x207   : > { %v623_v20 = vsel %vm622_vm9, %v615_v5, %v621_v18 }
 0x208   : > { %625 = vst [vmem:[#allocation4 + $0x2] sm:$0xf] %v623_v20 }
 0x20f   : > { %v626_v25 = vld [vmem:[#allocation4] sm:$0x3f] }
 0x210   : > { %v634_v26 = vmul.f32 %v632_v24, %v626_v25  ;;  %v652_v29 = vld [vmem:[#allocation4] sm:$0x3f] }
 0x211   : > { %v671_v32 = vld [vmem:[#allocation4] sm:$0x3f] }
 0x212   : > { %636 = vst [vmem:[#allocation1] ss:$4 sm:$0xff] %v634_v26  ;;  %v679_v34 = vmul.f32 %v677_v33, %v671_v32  ;;  %v698_v40 = vld [vmem:[#allocation4] sm:$0x3f] }
 0x213   : > { %v704_v42 = vmul.f32 %v702_v41, %v698_v40  ;;  %v723_v49 = vld [vmem:[#allocation4 + $0x2] sm:$0xf] }
 0x214   : > { %v732_v52 = vld [vmem:[#allocation4 + $0x2] sm:$0x3f] }
 0x215   : > { %v738_v54 = vmul.f32 %v736_v53, %v732_v52  ;;  %v757_v1 = vld [vmem:[#allocation4 + $0x2] sm:$0x3f] }
 0x216   : > { %v763_v3 = vmul.f32 %v761_v2, %v757_v1  ;;  %v782_v62 = vld [vmem:[#allocation4 + $0x2] sm:$0x3f] }
 0x217   : > { %v801_v6 = vld [vmem:[#allocation4 + $0x2] sm:$0x3f] }
 0x218   : > { %v807_v10 = vmul.f32 %v805_v8, %v801_v6 }
 0x219   : > { %v639_v27 = vld.sshfl [vmem:[#allocation1 + $0x10] sm:$0xff pattern:$0x73625140]  ;;  %v638_v28 = vld.sshfl [vmem:[#allocation1 + $0x8] sm:$0xff pattern:$0x73625140] }
 0x21a   : > { %644 = vrot.lane.b32.xlu1 %v639_v27, %s1224_s20  ;;  %642 = vrot.lane.b32.xlu0 %v638_v28, %s1224_s20  ;;  %v637_v30 = vld.sshfl [vmem:[#allocation1] sm:$0xff pattern:$0x73625140] }
 0x21b   : > { %640 = vrot.lane.b32.xlu2 %v637_v30, %s1224_s20  ;;  %655 = vst [vmem:[#allocation1 + $0x1] ss:$4 sm:$0xff] %v652_v29 }
 0x222   : > { %v658_v35 = vld.sshfl [vmem:[#allocation1 + $0x10] sm:$0xff pattern:$0x73625140]  ;;  %v657_v36 = vld.sshfl [vmem:[#allocation1 + $0x8] sm:$0xff pattern:$0x73625140] }
 0x223   : > { %663 = vrot.lane.b32.xlu1 %v658_v35, %s1225_s26  ;;  %661 = vrot.lane.b32.xlu0 %v657_v36, %s1225_s26  ;;  %v656_v38 = vld.sshfl [vmem:[#allocation1] sm:$0xff pattern:$0x73625140] }
 0x224   : > { %659 = vrot.lane.b32.xlu2 %v656_v38, %s1225_s26  ;;  %682 = vst [vmem:[#allocation1 + $0x2] ss:$4 sm:$0xff] %v679_v34 }
 0x22b   : > { %v685_v43 = vld.sshfl [vmem:[#allocation1 + $0x10] sm:$0xff pattern:$0x73625140]  ;;  %v684_v44 = vld.sshfl [vmem:[#allocation1 + $0x8] sm:$0xff pattern:$0x73625140] }
 0x22c   : > { %690 = vrot.lane.b32.xlu1 %v685_v43, %s1221_s12  ;;  %688 = vrot.lane.b32.xlu0 %v684_v44, %s1221_s12  ;;  %v683_v45 = vld.sshfl [vmem:[#allocation1] sm:$0xff pattern:$0x73625140] }
 0x22d   : > { %686 = vrot.lane.b32.xlu2 %v683_v45, %s1221_s12  ;;  %707 = vst [vmem:[#allocation1 + $0x3] ss:$4 sm:$0xff] %v704_v42  ;;  %v832_v42 = vld [vmem:[%s1579_s5] sm:$0xff] }
 0x234   : > { %v708_v47 = vld.sshfl [vmem:[#allocation1] sm:$0xff pattern:$0x73625140]  ;;  %v709_v48 = vld.sshfl [vmem:[#allocation1 + $0x8] sm:$0xff pattern:$0x73625140] }
 0x235   : > { %v710_v51 = vld.sshfl [vmem:[#allocation1 + $0x10] sm:$0xff pattern:$0x73625140] }
 0x236   : > { %725 = vst [vmem:[#allocation1] ss:$4 sm:$0xff] %v723_v49 }
 0x23d   : > { %v726_v55 = vld.sshfl [vmem:[#allocation1] sm:$0xff pattern:$0x73625140]  ;;  %v727_v7 = vld.sshfl [vmem:[#allocation1 + $0x8] sm:$0xff pattern:$0x73625140] }
 0x23e   : > { %741 = vst [vmem:[#allocation1 + $0x1] ss:$4 sm:$0xff] %v738_v54 }
 0x23f   : > { %730 = vst [vmem:[#allocation5] sm:$0x3] %v726_v55 }
 0x240   : > { %731 = vst [vmem:[#allocation5 + $0x18] sm:$0x3] %v727_v7 }
 0x245   : > { %v744_v9 = vld.sshfl [vmem:[#allocation1 + $0x10] sm:$0xff pattern:$0x73625140]  ;;  %v743_v57 = vld.sshfl [vmem:[#allocation1 + $0x8] sm:$0xff pattern:$0x73625140] }
 0x246   : > { %749 = vrot.lane.b32.xlu1 %v744_v9, %s1220_s10  ;;  %747 = vrot.lane.b32.xlu0 %v743_v57, %s1220_s10  ;;  %v742_v58 = vld.sshfl [vmem:[#allocation1] sm:$0xff pattern:$0x73625140] }
 0x247   : > { %745 = vrot.lane.b32.xlu2 %v742_v58, %s1220_s10  ;;  %766 = vst [vmem:[#allocation1 + $0x2] ss:$4 sm:$0xff] %v763_v3  ;;  %v825_v3 = vld [vmem:[#allocation9] sm:$0xff]  ;;  %s1015_s10 = sshll.u32 %s1284_s25, 4  ;;  %s893_s25 = scalar_lea.sflag [#allocation8], %s1356_s16 }
 0x24e   : > { %v769_v60 = vld.sshfl [vmem:[#allocation1 + $0x10] sm:$0xff pattern:$0x73625140]  ;;  %v768_v61 = vld.sshfl [vmem:[#allocation1 + $0x8] sm:$0xff pattern:$0x73625140] }
 0x24f   : > { %774 = vrot.lane.b32.xlu1 %v769_v60, %s1222_s13  ;;  %772 = vrot.lane.b32.xlu0 %v768_v61, %s1222_s13  ;;  %v767_v63 = vld.sshfl [vmem:[#allocation1] sm:$0xff pattern:$0x73625140] }
 0x250   : > { %770 = vrot.lane.b32.xlu2 %v767_v63, %s1222_s13  ;;  %785 = vst [vmem:[#allocation1 + $0x3] ss:$4 sm:$0xff] %v782_v62 }
 0x257   : > { %v788_v11 = vld.sshfl [vmem:[#allocation1 + $0x10] sm:$0xff pattern:$0x73625140]  ;;  %v787_v12 = vld.sshfl [vmem:[#allocation1 + $0x8] sm:$0xff pattern:$0x73625140] }
 0x258   : > { %793 = vrot.lane.b32.xlu1 %v788_v11, %s1226_s30  ;;  %791 = vrot.lane.b32.xlu0 %v787_v12, %s1226_s30  ;;  %v786_v13 = vld.sshfl [vmem:[#allocation1] sm:$0xff pattern:$0x73625140] }
 0x259   : > { %789 = vrot.lane.b32.xlu2 %v786_v13, %s1226_s30  ;;  %809 = vst [vmem:[#allocation1] ss:$4 sm:$0xff] %v807_v10 }
 0x260   : > { %v812_v14 = vld.sshfl [vmem:[#allocation1 + $0x10] sm:$0xff pattern:$0x73625140]  ;;  %v811_v15 = vld.sshfl [vmem:[#allocation1 + $0x8] sm:$0xff pattern:$0x73625140] }
 0x261   : > { %817 = vrot.lane.b32.xlu1 %v812_v14, %s1219_s27  ;;  %815 = vrot.lane.b32.xlu0 %v811_v15, %s1219_s27  ;;  %v810_v16 = vld.sshfl [vmem:[#allocation1] sm:$0xff pattern:$0x73625140] }
 0x262   : > { %813 = vrot.lane.b32.xlu2 %v810_v16, %s1219_s27  ;;  %s999_s27 = sshll.u32 %s1356_s16, 4 }
 0x263   : > { %s284_s20 = scalar_lea.vmem [#allocation11], %s999_s27 }
 0x264   : > { %s906_s26 = sshll.u32 %s284_s20, 4  ;;  %s907_s26 = int_to_ptr.vmem [resolvable:$true] %s906_s26 }
 0x269   : > { %715 = vrot.lane.b32.xlu1 %v710_v51, %s1223_s18  ;;  %713 = vrot.lane.b32.xlu0 %v709_v48, %s1223_s18 }
 0x26a   : > { %711 = vrot.lane.b32.xlu2 %v708_v47, %s1223_s18  ;;  %s904_s18 = scalar_lea.hbm %s1580_s6, %s1015_s10 }
 0x26b   : > { %s908_s30 = sshll.u32 %s904_s18, 4  ;;  %s909_s30 = int_to_ptr.hbm [resolvable:$true] %s908_s30 }
 0x26c   : > { %s1159_s17 = sshra.s32 %s909_s30, 4  ;;  %s1160_s17 = int_to_ptr.hbm [resolvable:$true] %s1159_s17 }
 0x26d   : > { %s1161_s19 = scalar_lea.hbm %s1160_s17, 16  ;;  %p1166_p9 = scmp.lt.s32.totalorder %s1160_s17, %s1580_s6 }
 0x26e   : > { %p1162_p1 = scmp.ne.s32.totalorder %s1160_s17, %s1161_s19  ;;  %p1167_p10 = scmp.lt.s32.totalorder %s1165_s7, %s1161_s19 }
 0x270   : > { %p1163_p4 = pnand %p1162_p1, %p1329_p3  ;;  %p1168_p2 = por %p1167_p10, %p1166_p9 }
 0x272   : > { %835 = vperm.xlu2 %1084, %v832_v42   ;;  %p1164_p8 = pneg %p1163_p4 }
 0x274   : > { %p1169_p11 = pnand %p1168_p2, %p1164_p8 }
 0x275   : > { %v641_v17 = vpop.permute.xlu2 %640 }
 0x27e   : > { %v660_v21 = vpop.permute.xlu2 %659 }
 0x287   : > { %v687_v27 = vpop.permute.xlu2 %686 }
 0x28c   : > { %v645_v18 = vpop.permute.xlu1 %644  ;;  %v643_v19 = vpop.permute.xlu0 %642 }
 0x28d   : > { %v646_v5 = vsel %vm323_vm6, %v641_v17, %v643_v19  ;;  %v647_v20 = vsel %vm323_vm6, %v643_v19, %v645_v18 }
 0x28e   : > { %650 = vst [vmem:[#allocation5 + $0x8] sm:$0x3] %v646_v5 }
 0x28f   : > { %651 = vst [vmem:[#allocation5 + $0x10] sm:$0x3] %v647_v20 }
 0x295   : > { %v664_v22 = vpop.permute.xlu1 %663  ;;  %v662_v24 = vpop.permute.xlu0 %661 }
 0x296   : > { %v665_v25 = vsel %vm347_vm7, %v660_v21, %v662_v24  ;;  %v666_v26 = vsel %vm347_vm7, %v662_v24, %v664_v22 }
 0x297   : > { %669 = vst [vmem:[#allocation5 + $0x8] sm:$0xc] %v665_v25 }
 0x298   : > { %670 = vst [vmem:[#allocation5 + $0x10] sm:$0xc] %v666_v26 }
 0x29e   : > { %v691_v28 = vpop.permute.xlu1 %690  ;;  %v689_v23 = vpop.permute.xlu0 %688 }
 0x29f   : > { %v692_v29 = vsel %vm384_vm5, %v687_v27, %v689_v23  ;;  %v693_v30 = vsel %vm384_vm5, %v689_v23, %v691_v28 }
 0x2a0   : > { %696 = vst [vmem:[#allocation5 + $0x8] sm:$0x30] %v692_v29 }
 0x2a1   : > { %697 = vst [vmem:[#allocation5 + $0x10] sm:$0x30] %v693_v30  ;;  %v746_v31 = vpop.permute.xlu2 %745 }
 0x2aa   : > { %v771_v36 = vpop.permute.xlu2 %770 }
 0x2b3   : > { %v790_v41 = vpop.permute.xlu2 %789 }
 0x2b8   : > { %v750_v32 = vpop.permute.xlu1 %749  ;;  %v748_v33 = vpop.permute.xlu0 %747 }
 0x2b9   : > { %v751_v34 = vsel %vm396_vm3, %v746_v31, %v748_v33  ;;  %v752_v35 = vsel %vm396_vm3, %v748_v33, %v750_v32 }
 0x2ba   : > { %755 = vst [vmem:[#allocation5] sm:$0xc] %v751_v34 }
 0x2bb   : > { %756 = vst [vmem:[#allocation5 + $0x18] sm:$0xc] %v752_v35 }
 0x2bc   : > { %v814_v47 = vpop.permute.xlu2 %813 }
 0x2c1   : > { %v775_v37 = vpop.permute.xlu1 %774  ;;  %v773_v38 = vpop.permute.xlu0 %772 }
 0x2c2   : > { %v776_v39 = vsel %vm364_vm2, %v771_v36, %v773_v38  ;;  %v777_v40 = vsel %vm364_vm2, %v773_v38, %v775_v37 }
 0x2c3   : > { %780 = vst [vmem:[#allocation5] sm:$0x30] %v776_v39 }
 0x2c4   : > { %781 = vst [vmem:[#allocation5 + $0x18] sm:$0x30] %v777_v40  ;;  %v712_v52 = vpop.permute.xlu2 %711 }
 0x2ca   : > { %v794_v43 = vpop.permute.xlu1 %793  ;;  %v792_v44 = vpop.permute.xlu0 %791 }
 0x2cb   : > { %v795_v45 = vsel %vm511_vm8, %v790_v41, %v792_v44  ;;  %v796_v46 = vsel %vm511_vm8, %v792_v44, %v794_v43 }
 0x2cc   : > { %799 = vst [vmem:[#allocation5] sm:$0xc0] %v795_v45  ;;  %v836_v58 = vpop.permute.xlu2 %835 }
 0x2cd   : > { %800 = vst [vmem:[#allocation5 + $0x18] sm:$0xc0] %v796_v46 }
 0x2d3   : > { %v818_v48 = vpop.permute.xlu1 %817  ;;  %v816_v49 = vpop.permute.xlu0 %815  ;;  %v828_v1 = vld [vmem:[#allocation5] sm:$0xff] }
 0x2d4   : > { %v819_v50 = vsel %vm303_vm1, %v814_v47, %v816_v49  ;;  %v820_v51 = vsel %vm303_vm1, %v816_v49, %v818_v48  ;;  %v829_v2 = vld [vmem:[#allocation5 + $0x18] sm:$0xff] }
 0x2d5   : > { %823 = vst [vmem:[#allocation5 + $0x28] sm:$0x3] %v819_v50 }
 0x2d6   : > { %824 = vst [vmem:[#allocation5 + $0x20] sm:$0x3] %v820_v51 }
 0x2db   : > { %v716_v53 = vpop.permute.xlu1 %715  ;;  %v714_v4 = vpop.permute.xlu0 %713 }
 0x2dc   : > { %v717_v54 = vsel %vm417_vm4, %v712_v52, %v714_v4  ;;  %v718_v55 = vsel %vm417_vm4, %v714_v4, %v716_v53  ;;  %v830_v7 = vld [vmem:[#allocation5 + $0x28] sm:$0x3] }
 0x2dd   : > { %721 = vst [vmem:[#allocation5 + $0x8] sm:$0xc0] %v717_v54  ;;  %1005 = vmatpush.msk.msra.mxu2 %vm622_vm9, %v830_v7  ;;  %v831_v56 = vld [vmem:[#allocation5 + $0x20] sm:$0x3] }
 0x2de   : > { %722 = vst [vmem:[#allocation5 + $0x10] sm:$0xc0] %v718_v55  ;;  %1007 = vmatpush.msk.msra.mxu3 %vm622_vm9, %v831_v56 }
 0x2df   : > { %862 = vmatpush.msra.mxu2 %v828_v1 }
 0x2e0   : > { %882 = vmatpush.msra.mxu3 %v829_v2 }
 0x2e4   : > { %v826_v9 = vld [vmem:[#allocation5 + $0x8] sm:$0xff] }
 0x2e5   : > { %863 = vmatpush.msra.mxu2 %v826_v9  ;;  %v827_v57 = vld [vmem:[#allocation5 + $0x10] sm:$0xff] }
 0x2e6   : > { %883 = vmatpush.msra.mxu3 %v827_v57  ;;  %1006 = vmatmul.msk.f32.vlgmr.msra.gmra.mxu2 %vm838_vm11, %v825_v3 }
 0x2e7   : > { %1008 = vmatmul.msk.f32.vlgmr.msra.gmra.mxu3 %vm838_vm11, %v825_v3 }
 0x369   : > { %v865_v59 = vpop.f32.mrf.mxu2 }
 0x36a   : > { %v866_v60 = vadd.f32 %v865_v59, %v836_v58  ;;  %v885_v61 = vpop.f32.mrf.mxu3 }
 0x36b   : > { %v886_v62 = vadd.f32 %v885_v61, %v836_v58 }
 0x36c   : > { %v888_v63 = vmax.f32 %v866_v60, 0.0 }
 0x36d   : > { %v889_v0 = vmax.f32 %v886_v62, 0.0 }
 0x36e   : > { %890 = vst [vmem:[%s284_s20] sm:$0xff] %v888_v63 }
 0x36f   : > { %891 = vst [vmem:[%s284_s20 + $0x8] sm:$0xff] %v889_v0 }
 0x370   : > { %1172 = shalt.err (!%p1169_p11)
}
 0x371   : > { %1022 = dma.vmem_to_hbm [thread:$0]  (%p1329_p3), %s907_s26, 256, %s909_s30, %s893_s25  }
 0x372 PF: > { %s920_s16 = sand.u32 1, %s1203_s21   ;;  %p1586_p12 = scmp.ge.s32.totalorder %s1215_s24, 2 }
 0x373   : > { %s921_s10 = scalar_lea.sflag [#allocation8], %s920_s16 }
 0x374   : > { %p1033_p13 = pnand %p1586_p12, %p1298_p6 }
 0x376   : > { %p1034_p0 = pneg %p1033_p13 }
 0x378   : > { %1198 = dma.done.wait (%p1034_p0), %s921_s10, 256  }
 0x379   : > { %1200 = vsyncadd (%p1034_p0), %s921_s10, 4294967040  ;;  %p20_p5 = scmp.ge.s32.totalorder %s1316_s11, 4   ;;  %s1587_s21 = smov %s1207_s22 }
 0x37a   : > { %s1588_s22 = smov %s1211_s23  ;;  %s1589_s23 = smov %s1325_s14 }
 0x37b   : > { %s1590_s24 = smov %s1316_s11  ;;  %22 = sbr.rel (!%p20_p5) target bundleno = 6 (0x6), region = 112 }
 0x380   :  { %927 = vsyncpa [#allocation7], 1 }
 0x381   :  { %929 = vsyncpa [#allocation7 + $0x1], 1 }
 0x382   :  { %930 = vsyncpa [#allocation10], 1 }
 0x383   :  { %931 = vsyncpa [#allocation8], 1 }
 0x384   :  { %933 = vsyncpa [#allocation8 + $0x1], 1 }

</bundles_post_ra>
